<compile_context>
chip_gen: v7x
topology: tpu7x:2x2x1
jax: 0.10.0
libtpu: 0.0.40
codegen_flags: <defaults>
</compile_context>

<pallas_src>
import jax
import jax.numpy as jnp
from jax.experimental import pallas as pl
from jax.experimental.pallas import tpu as pltpu


# --------------------------------------------------------------------------
# Kernels
# --------------------------------------------------------------------------
def _lsa_kernel_chw(x_ref, w1_ref, b1_ref, w2_ref, b2_ref, wsp_ref, bsp_ref, o_ref):
    # x block: (Bt, C, HW) -- HW on the lane axis (large spatial maps).
    xf = x_ref[...].astype(jnp.float32)            # single cast; f32 VPU math
    hw = xf.shape[2]

    # Channel attention: global avg pool -> 1x1 conv -> ReLU -> 1x1 conv -> h_sigmoid.
    mean = jnp.sum(xf, axis=2) * (1.0 / hw)                                      # (Bt, C)
    h = jnp.dot(mean, w1_ref[...], preferred_element_type=jnp.float32) + b1_ref[...]
    h = jnp.maximum(h, 0.0)                                                      # (Bt, Cr)
    ca = jnp.dot(h, w2_ref[...], preferred_element_type=jnp.float32) + b2_ref[...]
    ca = jnp.clip(ca + 3.0, 0.0, 6.0) * (1.0 / 6.0)                              # (Bt, C)

    # Spatial attention: 1x1 conv (C -> 1) as VPU multiply + sublane (C) reduce.
    sa = jnp.sum(xf * wsp_ref[...][None, :, :], axis=1, keepdims=True) + bsp_ref[...]  # (Bt,1,HW)
    sa = jnp.clip(sa + 3.0, 0.0, 6.0) * (1.0 / 6.0)

    # Apply the cheap sublane broadcast (sa) first; one lane broadcast of ca
    # afterwards (JAX does not CSE broadcast_in_dim -> keep it single).
    o_ref[...] = ((xf * sa) * ca[:, :, None]).astype(o_ref.dtype)


def _lsa_kernel_hwc(x_ref, w1_ref, b1_ref, w2_ref, b2_ref, wsp_ref, bsp_ref, o_ref):
    # x block: (Bt, HW, C) -- C on the lane axis (small-HW / wide-C stages).
    xf = x_ref[...].astype(jnp.float32)
    hw = xf.shape[1]

    mean = jnp.sum(xf, axis=1) * (1.0 / hw)                                      # (Bt, C)
    h = jnp.dot(mean, w1_ref[...], preferred_element_type=jnp.float32) + b1_ref[...]
    h = jnp.maximum(h, 0.0)                                                      # (Bt, Cr)
    ca = jnp.dot(h, w2_ref[...], preferred_element_type=jnp.float32) + b2_ref[...]
    ca = jnp.clip(ca + 3.0, 0.0, 6.0) * (1.0 / 6.0)                              # (Bt, C)

    # Spatial attention: lane-wise multiply with wsp (1, C) + lane (C) reduce.
    sa = jnp.sum(xf * wsp_ref[...][None, :, :], axis=2, keepdims=True) + bsp_ref[...]  # (Bt,HW,1)
    sa = jnp.clip(sa + 3.0, 0.0, 6.0) * (1.0 / 6.0)

    # ca broadcasts over sublanes (cheap) -> apply first; single lane
    # broadcast of sa afterwards.
    o_ref[...] = ((xf * ca[:, None, :]) * sa).astype(o_ref.dtype)


# --------------------------------------------------------------------------
# Tiling / budgeting helpers
# --------------------------------------------------------------------------
def _vmem_budget():
    """Returns (per-step footprint budget, vmem_limit_bytes), generation aware."""
    try:
        cap = int(pltpu.get_tpu_info().vmem_capacity_bytes)
    except Exception:
        cap = 64 * 1024 * 1024          # conservative fallback (v7x-sized VMEM)
    budget = (cap * 3) // 8             # 24 MiB on v7x, 48 MiB on v5e/v6e
    vmem_limit = min((cap * 3) // 4, 2 * budget + (4 << 20))
    return budget, vmem_limit


def _pick_batch_tile(n, per_batch_bytes, budget_bytes, min_steps=4):
    """Pick the per-step batch tile.

    Returns (bt, n_pad) with n_pad % bt == 0 (n_pad == n when no padding needed).
      * bt is capped so the pipelined per-step footprint (2x in + 2x out double
        buffers + f32 intermediates, encoded in per_batch_bytes) fits the budget.
      * bt also targets >= min_steps grid steps when n allows (>= 2 per core on
        dual-core v7x, steady-state pipelining on v5e/v6e).
      * An exact divisor of n near the target is preferred (no padding); if the
        best divisor is < half the target (e.g. prime n), a padded batch is used
        instead of collapsing to bt = 1.
    """
    bt_cap = max(1, budget_bytes // max(1, per_batch_bytes))
    bt_target = min(n, bt_cap, max(1, pl.cdiv(n, min_steps)))
    bt_div = 1
    for bt in range(bt_target, 0, -1):
        if n % bt == 0:
            bt_div = bt
            break
    if 2 * bt_div >= bt_target:
        return bt_div, n
    n_pad = pl.cdiv(n, bt_target) * bt_target
    return bt_target, n_pad


# --------------------------------------------------------------------------
# Wrapper
# --------------------------------------------------------------------------
@jax.jit
def lightweight_self_attention(x_nchw, params):
    """x_nchw: (N, C, H, W) NCHW activations.  Returns (N, C, H, W)."""
    w1, b1, w2, b2, wsp, bsp = params
    N, C, H, W = x_nchw.shape
    HW = H * W
    Cr = w1.shape[1]
    itemsize = jnp.dtype(x_nchw.dtype).itemsize

    # Layout choice: keep the lane axis dense.  Late MobileNetV3 stages
    # (7x7 maps, wide C) go channels-on-lanes; otherwise HW-on-lanes (free
    # reshape, no wrapper transpose).
    use_hwc = (HW < 128) and (C >= 128)
    if use_hwc:
        x_blk = jnp.swapaxes(x_nchw.reshape(N, C, HW), 1, 2)    # (N, HW, C)
        d0, d1 = HW, C
        wsp_arg = wsp.reshape(1, C)
        kernel = _lsa_kernel_hwc
    else:
        x_blk = x_nchw.reshape(N, C, HW)                        # (N, C, HW)
        d0, d1 = C, HW
        wsp_arg = wsp                                           # (C, 1)
        kernel = _lsa_kernel_chw

    budget, vmem_limit = _vmem_budget()
    # Per-batch-element per-step footprint: double-buffered input + output
    # blocks at the storage dtype plus ~2 f32 intermediates (xf + product).
    per_batch = C * HW * (4 * itemsize + 8)
    bt, n_pad = _pick_batch_tile(N, per_batch, budget, min_steps=4)
    if n_pad != N:
        x_blk = jnp.pad(x_blk, ((0, n_pad - N), (0, 0), (0, 0)))

    grid = (n_pad // bt,)
    full = lambda shape: pl.BlockSpec(shape, lambda b: (0,) * len(shape))

    cost = pl.CostEstimate(
        flops=int(6 * N * C * HW + 4 * N * C * Cr),   # pool + spatial dot + combine + channel MLP
        transcendentals=0,
        bytes_accessed=int(2 * N * C * HW * itemsize),
    )

    out = pl.pallas_call(
        kernel,
        out_shape=jax.ShapeDtypeStruct((n_pad, d0, d1), x_blk.dtype),
        grid_spec=pltpu.PrefetchScalarGridSpec(
            num_scalar_prefetch=0,
            grid=grid,
            in_specs=[
                pl.BlockSpec((bt, d0, d1), lambda b: (b, 0, 0)),   # x block
                full((C, Cr)),                                     # w1
                full((1, Cr)),                                     # b1
                full((Cr, C)),                                     # w2
                full((1, C)),                                      # b2
                full(wsp_arg.shape),                               # wsp
                full((1, 1)),                                      # bsp
            ],
            out_specs=pl.BlockSpec((bt, d0, d1), lambda b: (b, 0, 0)),
        ),
        compiler_params=pltpu.CompilerParams(
            dimension_semantics=("parallel",),
            vmem_limit_bytes=int(vmem_limit),
        ),
        cost_estimate=cost,
        input_output_aliases={0: 0},        # donate x into the output
    )(x_blk, w1, b1, w2, b2, wsp_arg, bsp)

    out = out[:N]
    if use_hwc:
        out = jnp.swapaxes(out, 1, 2)       # back to (N, C, HW)
    return out.reshape(N, C, H, W)


# --------------------------------------------------------------------------
# Parameter init + pure-JAX reference (for the correctness check)
# --------------------------------------------------------------------------
def make_params(key, in_channels, reduction_ratio=4):
    """Deterministic parameter init matching the nn.Module shapes.
    Conv2d 1x1 weights (out, in, 1, 1) are stored transposed as (in, out) matmul weights."""
    cr = in_channels // reduction_ratio
    ks = jax.random.split(key, 6)
    w1 = jax.random.normal(ks[0], (in_channels, cr), jnp.float32) * 0.1
    b1 = jax.random.normal(ks[1], (1, cr), jnp.float32) * 0.1
    w2 = jax.random.normal(ks[2], (cr, in_channels), jnp.float32) * 0.1
    b2 = jax.random.normal(ks[3], (1, in_channels), jnp.float32) * 0.1
    wsp = jax.random.normal(ks[4], (in_channels, 1), jnp.float32) * 0.1
    bsp = jax.random.normal(ks[5], (1, 1), jnp.float32) * 0.1
    return (w1, b1, w2, b2, wsp, bsp)


def reference(x_nchw, params):
    """Pure-JAX reference of the PyTorch forward."""
    w1, b1, w2, b2, wsp, bsp = params
    hsig = lambda v: jnp.clip(v + 3.0, 0.0, 6.0) / 6.0
    mean = jnp.mean(x_nchw, axis=(2, 3))                                  # (N, C)
    h = jnp.maximum(mean @ w1 + b1, 0.0)                                  # (N, Cr)
    ca = hsig(h @ w2 + b2)                                                # (N, C)
    sa = hsig(jnp.einsum("nchw,co->nohw", x_nchw, wsp)
              + bsp.reshape(1, 1, 1, 1))                                  # (N, 1, H, W)
    return x_nchw * ca[:, :, None, None] * sa


if __name__ == "__main__":
    key = jax.random.PRNGKey(0)
    k1, k2, k3, k4 = jax.random.split(key, 4)

    # Case 1: large-HW stage -> (Bt, C, HW) layout (HW on lanes).
    N, C, H, W = 2, 8, 16, 16                # reduction_ratio=4 -> hidden channels = 2
    x = jax.random.normal(k1, (N, C, H, W), jnp.float32)
    params = make_params(k2, C, reduction_ratio=4)
    ref = reference(x, params)
    out = jax.block_until_ready(lightweight_self_attention(x, params))
    assert out.shape == (N, C, H, W)
    assert jnp.max(jnp.abs(out - ref)) < 1e-4, "mismatch vs reference (CHW path)"

    # Case 2: small-HW / wide-C stage -> (Bt, HW, C) layout (C on lanes),
    #         also exercises the padded-batch (partial last tile) path.
    N2, C2, H2, W2 = 13, 128, 7, 7
    x2 = jax.random.normal(k3, (N2, C2, H2, W2), jnp.float32)
    params2 = make_params(k4, C2, reduction_ratio=4)
    ref2 = reference(x2, params2)
    out2 = jax.block_until_ready(lightweight_self_attention(x2, params2))
    assert out2.shape == (N2, C2, H2, W2)
    assert jnp.max(jnp.abs(out2 - ref2)) < 1e-3, "mismatch vs reference (HWC path)"

    print("KERNEL_OK")
</pallas_src>

<mosaic_0001>
module attributes {stable_mosaic.version = 11 : i64} {
  func.func @_lsa_kernel_chw(%arg0: i32, %arg1: memref<1x8x256xf32, #tpu.memory_space<vmem>>, %arg2: memref<8x2xf32, #tpu.memory_space<vmem>>, %arg3: memref<1x2xf32, #tpu.memory_space<vmem>>, %arg4: memref<2x8xf32, #tpu.memory_space<vmem>>, %arg5: memref<1x8xf32, #tpu.memory_space<vmem>>, %arg6: memref<8x1xf32, #tpu.memory_space<vmem>>, %arg7: memref<1x1xf32, #tpu.memory_space<vmem>>, %arg8: memref<1x8x256xf32, #tpu.memory_space<vmem>>) attributes {dimension_semantics = [#tpu.dimension_semantics<parallel>], iteration_bounds = array<i64: 2>, scalar_prefetch = 0 : i64, scratch_operands = 0 : i64, tpu.core_type = #tpu.core_type<tc>, window_params = [{transform_indices = @transform_0, window_bounds = array<i64: 1, 8, 256>}, {pipeline_mode = #tpu.pipeline_mode<synchronous>, transform_indices = @transform_1, window_bounds = array<i64: 8, 2>}, {pipeline_mode = #tpu.pipeline_mode<synchronous>, transform_indices = @transform_2, window_bounds = array<i64: 1, 2>}, {pipeline_mode = #tpu.pipeline_mode<synchronous>, transform_indices = @transform_3, window_bounds = array<i64: 2, 8>}, {pipeline_mode = #tpu.pipeline_mode<synchronous>, transform_indices = @transform_4, window_bounds = array<i64: 1, 8>}, {pipeline_mode = #tpu.pipeline_mode<synchronous>, transform_indices = @transform_5, window_bounds = array<i64: 8, 1>}, {pipeline_mode = #tpu.pipeline_mode<synchronous>, transform_indices = @transform_6, window_bounds = array<i64: 1, 1>}, {transform_indices = @transform_7, window_bounds = array<i64: 1, 8, 256>}]} {
    %c0 = arith.constant 0 : index
    %c0_0 = arith.constant 0 : index
    %c0_1 = arith.constant 0 : index
    %0 = vector.load %arg1[%c0, %c0_0, %c0_1] : memref<1x8x256xf32, #tpu.memory_space<vmem>>, vector<1x8x256xf32>
    %cst = arith.constant dense<0.000000e+00> : vector<1x8xf32>
    %1 = vector.multi_reduction <add>, %0, %cst [2] : vector<1x8x256xf32> to vector<1x8xf32>
    %cst_2 = arith.constant 3.906250e-03 : f32
    %2 = vector.broadcast %cst_2 : f32 to vector<1x8xf32>
    %3 = arith.mulf %1, %2 : vector<1x8xf32>
    %c0_3 = arith.constant 0 : index
    %c0_4 = arith.constant 0 : index
    %4 = vector.load %arg2[%c0_3, %c0_4] : memref<8x2xf32, #tpu.memory_space<vmem>>, vector<8x2xf32>
    %cst_5 = arith.constant dense<0.000000e+00> : vector<1x2xf32>
    %5 = tpu.matmul %3, %4, %cst_5 {dimension_numbers = #tpu.dot_dimension_numbers<[1], [0], [0], [1], [0, 0, 1, 1], [], []>} : vector<1x8xf32>, vector<8x2xf32>, vector<1x2xf32> -> vector<1x2xf32>
    %c0_6 = arith.constant 0 : index
    %c0_7 = arith.constant 0 : index
    %6 = vector.load %arg3[%c0_6, %c0_7] : memref<1x2xf32, #tpu.memory_space<vmem>>, vector<1x2xf32>
    %7 = arith.addf %5, %6 : vector<1x2xf32>
    %cst_8 = arith.constant 0.000000e+00 : f32
    %8 = vector.broadcast %cst_8 : f32 to vector<1x2xf32>
    %9 = arith.maximumf %7, %8 : vector<1x2xf32>
    %c0_9 = arith.constant 0 : index
    %c0_10 = arith.constant 0 : index
    %10 = vector.load %arg4[%c0_9, %c0_10] : memref<2x8xf32, #tpu.memory_space<vmem>>, vector<2x8xf32>
    %cst_11 = arith.constant dense<0.000000e+00> : vector<1x8xf32>
    %11 = tpu.matmul %9, %10, %cst_11 {dimension_numbers = #tpu.dot_dimension_numbers<[1], [0], [0], [1], [0, 0, 1, 1], [], []>} : vector<1x2xf32>, vector<2x8xf32>, vector<1x8xf32> -> vector<1x8xf32>
    %c0_12 = arith.constant 0 : index
    %c0_13 = arith.constant 0 : index
    %12 = vector.load %arg5[%c0_12, %c0_13] : memref<1x8xf32, #tpu.memory_space<vmem>>, vector<1x8xf32>
    %13 = arith.addf %11, %12 : vector<1x8xf32>
    %cst_14 = arith.constant 3.000000e+00 : f32
    %14 = vector.broadcast %cst_14 : f32 to vector<1x8xf32>
    %15 = arith.addf %13, %14 : vector<1x8xf32>
    %cst_15 = arith.constant 0.000000e+00 : f32
    %cst_16 = arith.constant 6.000000e+00 : f32
    %16 = vector.broadcast %cst_15 : f32 to vector<1x8xf32>
    %17 = arith.maximumf %16, %15 : vector<1x8xf32>
    %18 = vector.broadcast %cst_16 : f32 to vector<1x8xf32>
    %19 = arith.minimumf %18, %17 : vector<1x8xf32>
    %cst_17 = arith.constant 0.166666672 : f32
    %20 = vector.broadcast %cst_17 : f32 to vector<1x8xf32>
    %21 = arith.mulf %19, %20 : vector<1x8xf32>
    %c0_18 = arith.constant 0 : index
    %c0_19 = arith.constant 0 : index
    %22 = vector.load %arg6[%c0_18, %c0_19] : memref<8x1xf32, #tpu.memory_space<vmem>>, vector<8x1xf32>
    %23 = vector.shape_cast %22 : vector<8x1xf32> to vector<1x8x1xf32>
    %24 = vector.broadcast %23 : vector<1x8x1xf32> to vector<1x8x256xf32>
    %25 = arith.mulf %0, %24 : vector<1x8x256xf32>
    %cst_20 = arith.constant dense<0.000000e+00> : vector<1x256xf32>
    %26 = vector.multi_reduction <add>, %25, %cst_20 [1] : vector<1x8x256xf32> to vector<1x256xf32>
    %27 = vector.shape_cast %26 : vector<1x256xf32> to vector<1x1x256xf32>
    %c0_21 = arith.constant 0 : index
    %c0_22 = arith.constant 0 : index
    %28 = vector.load %arg7[%c0_21, %c0_22] : memref<1x1xf32, #tpu.memory_space<vmem>>, vector<1x1xf32>
    %29 = vector.shape_cast %28 : vector<1x1xf32> to vector<1x1x1xf32>
    %30 = vector.broadcast %29 : vector<1x1x1xf32> to vector<1x1x256xf32>
    %31 = arith.addf %27, %30 : vector<1x1x256xf32>
    %cst_23 = arith.constant 3.000000e+00 : f32
    %32 = vector.broadcast %cst_23 : f32 to vector<1x1x256xf32>
    %33 = arith.addf %31, %32 : vector<1x1x256xf32>
    %cst_24 = arith.constant 0.000000e+00 : f32
    %cst_25 = arith.constant 6.000000e+00 : f32
    %34 = vector.broadcast %cst_24 : f32 to vector<1x1x256xf32>
    %35 = arith.maximumf %34, %33 : vector<1x1x256xf32>
    %36 = vector.broadcast %cst_25 : f32 to vector<1x1x256xf32>
    %37 = arith.minimumf %36, %35 : vector<1x1x256xf32>
    %cst_26 = arith.constant 0.166666672 : f32
    %38 = vector.broadcast %cst_26 : f32 to vector<1x1x256xf32>
    %39 = arith.mulf %37, %38 : vector<1x1x256xf32>
    %40 = vector.broadcast %39 : vector<1x1x256xf32> to vector<1x8x256xf32>
    %41 = arith.mulf %0, %40 : vector<1x8x256xf32>
    %42 = vector.shape_cast %21 : vector<1x8xf32> to vector<1x8x1xf32>
    %43 = vector.broadcast %42 : vector<1x8x1xf32> to vector<1x8x256xf32>
    %44 = arith.mulf %41, %43 : vector<1x8x256xf32>
    %c0_27 = arith.constant 0 : index
    %c0_28 = arith.constant 0 : index
    %c0_29 = arith.constant 0 : index
    %45 = vector.load %arg8[%c0_27, %c0_28, %c0_29] : memref<1x8x256xf32, #tpu.memory_space<vmem>>, vector<1x8x256xf32>
    tpu.vector_store %arg8[%c0_27, %c0_28, %c0_29], %44 {strides = array<i32>} : memref<1x8x256xf32, #tpu.memory_space<vmem>>, vector<1x8x256xf32>,
    return
  }
  func.func @transform_0(%arg0: i32) -> (i32, i32, i32) {
    %c0_i32 = arith.constant 0 : i32
    %c0_i32_0 = arith.constant 0 : i32
    %c0_i32_1 = arith.constant 0 : i32
    return %arg0, %c0_i32, %c0_i32_0 : i32, i32, i32
  }
  func.func @transform_1(%arg0: i32) -> (i32, i32) {
    %c0_i32 = arith.constant 0 : i32
    %c0_i32_0 = arith.constant 0 : i32
    %c0_i32_1 = arith.constant 0 : i32
    return %c0_i32, %c0_i32_0 : i32, i32
  }
  func.func @transform_2(%arg0: i32) -> (i32, i32) {
    %c0_i32 = arith.constant 0 : i32
    %c0_i32_0 = arith.constant 0 : i32
    %c0_i32_1 = arith.constant 0 : i32
    return %c0_i32, %c0_i32_0 : i32, i32
  }
  func.func @transform_3(%arg0: i32) -> (i32, i32) {
    %c0_i32 = arith.constant 0 : i32
    %c0_i32_0 = arith.constant 0 : i32
    %c0_i32_1 = arith.constant 0 : i32
    return %c0_i32, %c0_i32_0 : i32, i32
  }
  func.func @transform_4(%arg0: i32) -> (i32, i32) {
    %c0_i32 = arith.constant 0 : i32
    %c0_i32_0 = arith.constant 0 : i32
    %c0_i32_1 = arith.constant 0 : i32
    return %c0_i32, %c0_i32_0 : i32, i32
  }
  func.func @transform_5(%arg0: i32) -> (i32, i32) {
    %c0_i32 = arith.constant 0 : i32
    %c0_i32_0 = arith.constant 0 : i32
    %c0_i32_1 = arith.constant 0 : i32
    return %c0_i32, %c0_i32_0 : i32, i32
  }
  func.func @transform_6(%arg0: i32) -> (i32, i32) {
    %c0_i32 = arith.constant 0 : i32
    %c0_i32_0 = arith.constant 0 : i32
    %c0_i32_1 = arith.constant 0 : i32
    return %c0_i32, %c0_i32_0 : i32, i32
  }
  func.func @transform_7(%arg0: i32) -> (i32, i32, i32) {
    %c0_i32 = arith.constant 0 : i32
    %c0_i32_0 = arith.constant 0 : i32
    %c0_i32_1 = arith.constant 0 : i32
    return %arg0, %c0_i32, %c0_i32_0 : i32, i32, i32
  }
}

</mosaic_0001>

<bundles_post_ra>
// kernel: lightweight_self_attention.1
= control target key start
LH: loop header
LB: loop body
LE: loop exit
PB: predicated region body
PF: predicated region fallthrough
CT: control target
= control target key end

     0   :  { %s659_s26 = smov 0   ;;  %s708_s0 = inlined_call_operand.vmem [shape: f32[2,8,256], index: 0, kind: input, shape index: {}, may-alias: {0,7}]   ;;  %s709_s1 = inlined_call_operand.vmem [shape: f32[8,2], index: 1, kind: input, shape index: {}]   ;;  %s710_s2 = inlined_call_operand.vmem [shape: f32[1,2], index: 2, kind: input, shape index: {}]   ;;  %s711_s3 = inlined_call_operand.vmem [shape: f32[2,8], index: 3, kind: input, shape index: {}]   ;;  %s712_s4 = inlined_call_operand.vmem [shape: f32[1,8], index: 4, kind: input, shape index: {}]   ;;  %s713_s5 = inlined_call_operand.vmem [shape: f32[8,1], index: 5, kind: input, shape index: {}]   ;;  %s714_s6 = inlined_call_operand.<no memory space> [shape: f32[1,1], index: 6, kind: input, shape index: {}]   ;;  %s715_s7 = inlined_call_operand.vmem [shape: f32[2,8,256], index: 7, kind: output, shape index: {}, may-alias: {0,7}]  }
   0x1   :  { %v12_v0 = vstv %s714_s6 }
   0x2   :  { %13 = vst [vmem:[#allocation2] sm:$0x1] %v12_v0 }
   0x3 LB: > { %s562_s27 = sadd.s32 4294967295, %s611_s26   ;;  %p566_p0 = scmp.ge.s32.totalorder %s611_s26, 1  ;;  %s611_s26 = sphi %s659_s26, %s19_s26  }
   0x4   : > { %p239_p1 = scmp.lt.s32.totalorder %s611_s26, 3 }
   0x6   : > { %p240_p2 = pnand %p566_p0, %p239_p1 }
   0x7   : > { %p271_p3 = scmp.lt.s32.totalorder (!%p240_p2), %s562_s27, 1  ;;  %v613_v4 = vmov (!%p240_p2), 0.0   ;;  %v287_v5 = vld [vmem:[%s709_s1] sm:$0xff] (!%p240_p2)  ;;  %vm614_vm0 = vmmov (!%p240_p2), 0   ;;  %v290_v6 = vlaneseq (!%p240_p2)  ;;  %vm296_vm1 = vcmask (!%p240_p2), 64512  }
   0x8   : > { %243 = sbr.rel (%p240_p2) target bundleno = 725 (0x2d5), region = 48  ;;  %582 = vmatprep.subr.mxu0 (!%p240_p2), %v613_v4  ;;  %587 = vmatprep.subr.mxu1 (!%p240_p2), %v613_v4  ;;  %v370_v13 = vld [vmem:[%s711_s3] sm:$0x3] (!%p240_p2)  ;;  %vm376_vm2 = vcmask (!%p240_p2), 1041408   ;;  %v615_v16 = vmov (!%p240_p2), 0   ;;  %vm372_vm3 = vcmask (!%p240_p2), 15360  }
   0x9   : > { %583 = vmatpush3.msra.mxu0 (!%p240_p2), %v287_v5  ;;  %584 = vmatprep.mubr.msk.f32.mxu0 (!%p240_p2), %vm614_vm0, %v613_v4  ;;  %v291_v7 = vand.u32 (!%p240_p2), 127, %v290_v6  ;;  %v293_v8 = vshrl.u32 (!%p240_p2), %v290_v6, 7  ;;  %v454_v14 = vld [vmem:[%s713_s5] sm:$0xff] (!%p240_p2) }
   0xa   : > { %589 = vmatprep.mubr.msk.f32.mxu1 (!%p240_p2), %vm614_vm0, %v613_v4  ;;  %588 = vmatpush3.msk.msra.mxu1 (!%p240_p2), %vm376_vm2, %v370_v13  ;;  %v474_v15 = vld [vmem:[#allocation2] sm:$0x1] (!%p240_p2) }
   0xb   : > { %v294_v9 = vsub.s32 (!%p240_p2), %v291_v7, %v293_v8  ;;  %603 = vset.pattern.permute.xlu0 (!%p240_p2), %v615_v16  ;;  %604 = vset.pattern.permute.xlu1 (!%p240_p2), %v615_v16  ;;  %v288_v17 = vld [vmem:[%s710_s2] sm:$0x1] (!%p240_p2)  ;;  %v482_v29 = vsub.s32 (!%p240_p2), 0, %v293_v8 }
   0xc   : > { %477 = vperm.xlu1 (!%p240_p2), %604, %v474_v15   ;;  %v371_v22 = vld [vmem:[%s712_s4] sm:$0x1] (!%p240_p2) }
   0xf   : > { %s717_s27 = smov (!%p271_p3, %s562_s27), 1 }
  0x10   : > { %s576_s6 = sshll.u32 %s717_s27, 4 }
  0x11   : > { %s275_s30 = scalar_lea.vmem %s708_s0, %s576_s6  ;;  %s280_s20 = scalar_lea.vmem %s715_s7, %s576_s6 }
  0x12   : > { %v675_v1 = vld [vmem:[%s275_s30] sm:$0xff]  ;;  %v677_v2 = vld [vmem:[%s275_s30 + $0x8] sm:$0xff] }
  0x13   : > { %v283_v3 = vadd.f32 %v677_v2, %v675_v1 }
  0x15   : > { %284 = vadd.xlane.f32.xlu0 %v283_v3 }
  0x2b   : > { %457 = vperm.xlu0 %603, %v454_v14  }
  0x8b   : > { %v478_v45 = vpop.permute.xlu1 %477 }
  0x8c   : > { %v483_v48 = vrot.slane %v478_v45, %v482_v29 }
  0xa2   : > { %v285_v10 = vpop.xlane.xlu0 %284 }
  0xa3   : > { %v286_v11 = vmul.f32 0.00390625, %v285_v10 }
  0xa5   : > { %v295_v12 = vrot.slane %v286_v11, %v294_v9 }
  0xa7   : > { %585 = vmatmul.mubr.msk.f32.vlgmr.msra.gmra.mrb[0].mxu0 %vm296_vm1, %v295_v12 }
  0xaa   : > { %v458_v32 = vpop.permute.xlu0 %457 }
  0xab   : > { %v460_v33 = vmul.f32 %v458_v32, %v675_v1  ;;  %v461_v34 = vmul.f32 %v458_v32, %v677_v2 }
  0xad   : > { %v462_v35 = vrot.slane %v460_v33, 4  ;;  %v468_v36 = vrot.slane %v461_v34, 4 }
  0xaf   : > { %v463_v37 = vadd.f32 %v462_v35, %v460_v33  ;;  %v469_v38 = vadd.f32 %v468_v36, %v461_v34 }
  0xb1   : > { %v464_v39 = vrot.slane %v463_v37, 2  ;;  %v470_v40 = vrot.slane %v469_v38, 2 }
  0xb3   : > { %v465_v41 = vadd.f32 %v464_v39, %v463_v37  ;;  %v471_v42 = vadd.f32 %v470_v40, %v469_v38 }
  0xb5   : > { %v466_v43 = vrot.slane %v465_v41, 1  ;;  %v472_v44 = vrot.slane %v471_v42, 1 }
  0xb7   : > { %v467_v46 = vadd.f32 %v466_v43, %v465_v41  ;;  %v473_v47 = vadd.f32 %v472_v44, %v471_v42 }
  0xb9   : > { %v484_v49 = vadd.f32 %v483_v48, %v467_v46  ;;  %v485_v50 = vadd.f32 %v483_v48, %v473_v47 }
  0xbb   : > { %v486_v51 = vadd.f32 3.0, %v484_v49  ;;  %v487_v52 = vadd.f32 3.0, %v485_v50 }
  0xbd   : > { %v488_v53 = vmax.f32 %v486_v51, 0.0  ;;  %v489_v54 = vmax.f32 %v487_v52, 0.0 }
  0xbf   : > { %v490_v55 = vmin.f32 %v488_v53, 6.0  ;;  %v491_v56 = vmin.f32 %v489_v54, 6.0 }
  0xc1   : > { %v492_v57 = vmul.f32 0.16666667, %v490_v55  ;;  %v493_v58 = vmul.f32 0.16666667, %v491_v56 }
  0xc3   : > { %v494_v59 = vmul.f32 %v492_v57, %v675_v1  ;;  %v495_v60 = vmul.f32 %v493_v58, %v677_v2 }
 0x17a   : > { %v365_v18 = vpop.f32.mrb[0].mxu0 }
 0x17b   : > { %v366_v19 = vadd.f32 %v365_v18, %v288_v17  ;;  %v586_v20 = vpop.f32.mrb[1].mxu0 }
 0x17d   : > { %v369_v21 = vmax.f32 %v366_v19, 0.0 }
 0x17f   : > { %590 = vmatmul.mubr.msk.f32.vlgmr.msra.gmra.mrb[0].mxu1 %vm372_vm3, %v369_v21 }
 0x252   : > { %v446_v23 = vpop.f32.mrb[0].mxu1 }
 0x253   : > { %v447_v24 = vadd.f32 %v446_v23, %v371_v22  ;;  %v591_v25 = vpop.f32.mrb[1].mxu1 }
 0x255   : > { %v450_v26 = vadd.f32 3.0, %v447_v24 }
 0x257   : > { %v451_v27 = vmax.f32 %v450_v26, 0.0 }
 0x259   : > { %v452_v28 = vmin.f32 %v451_v27, 6.0 }
 0x25b   : > { %v453_v30 = vmul.f32 0.16666667, %v452_v28 }
 0x25d   : > { %v499_v31 = vrot.slane %v453_v30, %v482_v29 }
 0x25f   : > { %501 = vbcast.lane.b32.xlu1 %v499_v31, 256 }
 0x2d1   : > { %v502_v61 = vpop.permute.xlu1 %501 }
 0x2d2   : > { %v503_v62 = vmul.f32 %v502_v61, %v494_v59  ;;  %v504_v63 = vmul.f32 %v502_v61, %v495_v60 }
 0x2d4   : > { %505 = vst [vmem:[%s280_s20] sm:$0xff] %v503_v62  ;;  %506 = vst [vmem:[%s280_s20 + $0x8] sm:$0xff] %v504_v63 }
 0x2d5 PF: > { %s19_s26 = sadd.s32 1, %s611_s26  }
 0x2d6   : > { %p16_p4 = scmp.ge.s32.totalorder %s19_s26, 4  }
 0x2d8   :  { %18 = sbr.rel (!%p16_p4) target bundleno = 3 (0x3), region = 78 }

</bundles_post_ra>
